<compile_context>
chip_gen: v6e
topology: v6e:2x2x1
jax: 0.10.0
libtpu: 0.0.40
codegen_flags: <defaults>
</compile_context>

<pallas_src>
import jax
import jax.numpy as jnp
import numpy as np
from jax.experimental import pallas as pl
from jax.experimental.pallas import tpu as pltpu

EPS = 1e-5       # torch.nn.LayerNorm default
LANE = 128
MXU_N = 256      # v6e/v7x MXU tile width; 128-wide trailing N chunks half-fill a pass.


def _round_up(x, m):
    return ((x + m - 1) // m) * m


def prenorm_kernel(x_ref, w_ref, b_ref, o_ref):
    """One (tile_rows, D) activation tile against one (D, tn) weight slab."""
    x = x_ref[...].astype(jnp.float32)

    # LayerNorm statistics over the last (lane) axis -- matches torch:
    # biased variance, eps inside rsqrt, f32 math.  Padded rows are all-zero:
    # xn = 0 * rsqrt(eps) = 0 (finite); they are sliced off in the wrapper.
    mean = jnp.mean(x, axis=-1, keepdims=True)
    centered = x - mean
    var = jnp.mean(centered * centered, axis=-1, keepdims=True)
    xn = centered * jax.lax.rsqrt(var + EPS)

    # fn == Linear: bf16 MXU matmul with f32 accumulation.  The LN affine is
    # already folded into w_ref / b_ref by the wrapper.
    out = jnp.dot(xn.astype(jnp.bfloat16), w_ref[...],
                  preferred_element_type=jnp.float32)
    o_ref[...] = (out + b_ref[...]).astype(o_ref.dtype)


def fold_prenorm_linear_params(gamma, beta, w, wb):
    """Fold the LayerNorm affine into the Linear.  Call ONCE at parameter-load
    time (not per forward):
        (xn * g + b) @ W + wb == xn @ (g[:, None] * W) + (b @ W + wb)
    Returns (w_folded bf16 (D, D_out), b_folded f32 (D_out,)).
    """
    w32 = w.astype(jnp.float32)
    w_folded = (gamma.astype(jnp.float32)[:, None] * w32).astype(jnp.bfloat16)
    b_folded = beta.astype(jnp.float32) @ w32 + wb.astype(jnp.float32)
    return w_folded, b_folded


def prenorm_linear_folded(x, w_folded, b_folded, *, tile_rows=512,
                          tile_cols=512, out_dtype=None):
    """Fused LayerNorm + Linear on pre-folded parameters.

    x: (B, S, D).  w_folded: (D, D_out) bf16 (gamma folded in).
    b_folded: (D_out,) f32 (beta @ W + bias folded in).
    On v7x prefer tile_rows=256-512; on v5e/v6e 512-1024.
    Pass out_dtype=jnp.bfloat16 when the downstream op accepts bf16.
    """
    B, S, D = x.shape
    D_out = w_folded.shape[1]
    rows = B * S
    if out_dtype is None:
        out_dtype = x.dtype

    # ---- Output-column (N) tiling: align to the MXU N width, then pick the
    # largest tn <= tile_cols that divides the aligned width (so no padding
    # beyond 256-alignment).  tn is a multiple of 128 -> lane-dense stores.
    d_out_p = _round_up(max(D_out, MXU_N), MXU_N)
    max_tn = max(MXU_N, (min(tile_cols, d_out_p) // MXU_N) * MXU_N)
    tn = MXU_N
    for cand in range(max_tn, 0, -MXU_N):
        if d_out_p % cand == 0:
            tn = cand
            break

    w_p = w_folded.astype(jnp.bfloat16)
    b_p = b_folded.astype(jnp.float32)
    if d_out_p != D_out:
        w_p = jnp.pad(w_p, ((0, 0), (0, d_out_p - D_out)))
        b_p = jnp.pad(b_p, ((0, d_out_p - D_out),))
    b_p = b_p.reshape(1, d_out_p)

    # ---- Row tiling: clamp the tile to the (8-aligned) row count so tiny
    # inputs are not padded to a full 512-row tile.
    tile_rows = max(8, (min(tile_rows, _round_up(rows, 8)) // 8) * 8)
    rows_p = _round_up(rows, tile_rows)
    x2 = x.reshape(rows, D)
    # TODO(synk): if the model is bf16-tolerant, cast x2 to bf16 here to halve
    # the input HBM read (LN stats are still computed in f32 in the kernel).
    if rows_p != rows:
        x2 = jnp.pad(x2, ((0, rows_p - rows), (0, 0)))

    # ---- VMEM budget derived from the actual tile footprint (+50% headroom),
    # capped at 48 MiB so we never claim all of v7x's 64 MiB physical VMEM.
    vmem_need = (2 * tile_rows * D * x2.dtype.itemsize          # x, double-buffered
                 + 1 * D * tn * 2                               # weight slab, 1 buffer
                 + 1 * tn * 4                                   # bias slab, 1 buffer
                 + 2 * tile_rows * tn * np.dtype(out_dtype).itemsize)  # out, 2 buffers
    vmem_limit = int(min(max(3 * vmem_need // 2 + (4 << 20), 16 << 20), 48 << 20))

    grid = (d_out_p // tn, rows_p // tile_rows)   # N outer, rows inner

    out = pl.pallas_call(
        prenorm_kernel,
        out_shape=jax.ShapeDtypeStruct((rows_p, d_out_p), out_dtype),
        grid_spec=pltpu.PrefetchScalarGridSpec(
            num_scalar_prefetch=0,
            grid=grid,
            in_specs=[
                # Activations: streamed over the inner row axis.
                pl.BlockSpec((tile_rows, D), lambda n, i: (i, 0)),
                # Weight slab: index changes only when the outer N axis steps,
                # so one buffer suffices (half the weight VMEM) and each slab
                # is DMA'd from HBM exactly once, reused across all row tiles.
                pl.BlockSpec((D, tn), lambda n, i: (0, n),
                             pipeline_mode=pl.Buffered(1)),
                pl.BlockSpec((1, tn), lambda n, i: (0, n),
                             pipeline_mode=pl.Buffered(1)),
            ],
            out_specs=pl.BlockSpec((tile_rows, tn), lambda n, i: (i, n)),
        ),
        compiler_params=pltpu.CompilerParams(
            # Every (n, i) step writes an independent output block (no
            # accumulation), so both axes are safely "parallel"; on v7x the
            # dominant activation stream can be megacore-sharded along rows.
            dimension_semantics=("parallel", "parallel"),
            vmem_limit_bytes=vmem_limit,
        ),
    )(x2, w_p, b_p)

    out = out[:rows, :D_out]
    return out.reshape(B, S, D_out)


def prenorm_linear(x, gamma, beta, w, wb, **kwargs):
    """PreNorm(dim, Linear(dim, D_out)).forward(x).  Convenience wrapper that
    folds the LN affine per call; real models should call
    fold_prenorm_linear_params() once at parameter load instead."""
    w_folded, b_folded = fold_prenorm_linear_params(gamma, beta, w, wb)
    return prenorm_linear_folded(x, w_folded, b_folded, **kwargs)


def _reference(x, gamma, beta, w, wb):
    xf = x.astype(jnp.float32)
    mean = jnp.mean(xf, axis=-1, keepdims=True)
    var = jnp.mean((xf - mean) ** 2, axis=-1, keepdims=True)
    xn = (xf - mean) / jnp.sqrt(var + EPS)
    y = xn * gamma + beta
    return (y @ w + wb).astype(x.dtype)


def _make_params(key, D, D_out):
    kw, kb, kg, kbeta = jax.random.split(key, 4)
    gamma = 1.0 + 0.1 * jax.random.normal(kg, (D,), dtype=jnp.float32)
    beta = 0.1 * jax.random.normal(kbeta, (D,), dtype=jnp.float32)
    bound = 1.0 / (D ** 0.5)
    w = jax.random.uniform(kw, (D, D_out), minval=-bound, maxval=bound,
                           dtype=jnp.float32)
    wb = jax.random.uniform(kb, (D_out,), minval=-bound, maxval=bound,
                            dtype=jnp.float32)
    return gamma, beta, w, wb


if __name__ == "__main__":
    key = jax.random.PRNGKey(0)
    k1, k2, k3, k4 = jax.random.split(key, 4)

    # --- Test 1: the spec's typical small shape (batch=2, seq=8, hidden=32).
    B, S, D = 2, 8, 32
    x = jax.random.normal(k1, (B, S, D), dtype=jnp.float32)
    gamma, beta, w, wb = _make_params(k2, D, D)

    # Fold the LN affine into the linear ONCE (parameter-load time).
    w_folded, b_folded = fold_prenorm_linear_params(gamma, beta, w, wb)
    out = prenorm_linear_folded(x, w_folded, b_folded)
    out = jax.block_until_ready(out)

    ref = _reference(x, gamma, beta, w, wb)
    assert out.shape == (B, S, D), out.shape
    # bf16 MXU inputs with f32 accumulation -> loosened tolerance vs f32 ref.
    assert jnp.allclose(out, ref, atol=5e-2, rtol=5e-2), (
        float(jnp.max(jnp.abs(out - ref))))

    # --- Test 2: exercise the 2-D grid (multiple N slabs, multiple row tiles,
    # row padding) with a modest rectangular Linear.
    B2, S2, D2, D_out2 = 2, 200, 128, 768
    x2 = jax.random.normal(k3, (B2, S2, D2), dtype=jnp.float32)
    gamma2, beta2, w2, wb2 = _make_params(k4, D2, D_out2)
    out2 = prenorm_linear(x2, gamma2, beta2, w2, wb2,
                          tile_rows=128, tile_cols=512)
    out2 = jax.block_until_ready(out2)
    ref2 = _reference(x2, gamma2, beta2, w2, wb2)
    assert out2.shape == (B2, S2, D_out2), out2.shape
    assert jnp.allclose(out2, ref2, atol=5e-2, rtol=5e-2), (
        float(jnp.max(jnp.abs(out2 - ref2))))

    print("KERNEL_OK")
</pallas_src>

<mosaic_0001>
module attributes {stable_mosaic.version = 11 : i64} {
  func.func @prenorm_kernel(%arg0: i32, %arg1: i32, %arg2: memref<16x32xf32, #tpu.memory_space<vmem>>, %arg3: memref<32x256xbf16, #tpu.memory_space<vmem>>, %arg4: memref<1x256xf32, #tpu.memory_space<vmem>>, %arg5: memref<16x256xf32, #tpu.memory_space<vmem>>) attributes {dimension_semantics = [#tpu.dimension_semantics<parallel>, #tpu.dimension_semantics<parallel>], iteration_bounds = array<i64: 1, 1>, scalar_prefetch = 0 : i64, scratch_operands = 0 : i64, tpu.core_type = #tpu.core_type<tc>, window_params = [{transform_indices = @transform_0, window_bounds = array<i64: 16, 32>}, {pipeline_mode = #tpu.pipeline_mode<synchronous>, transform_indices = @transform_1, window_bounds = array<i64: 32, 256>}, {pipeline_mode = #tpu.pipeline_mode<synchronous>, transform_indices = @transform_2, window_bounds = array<i64: 1, 256>}, {transform_indices = @transform_3, window_bounds = array<i64: 16, 256>}]} {
    %c0 = arith.constant 0 : index
    %c0_0 = arith.constant 0 : index
    %0 = vector.load %arg2[%c0, %c0_0] : memref<16x32xf32, #tpu.memory_space<vmem>>, vector<16x32xf32>
    %cst = arith.constant dense<0.000000e+00> : vector<16xf32>
    %1 = vector.multi_reduction <add>, %0, %cst [1] : vector<16x32xf32> to vector<16xf32>
    %2 = vector.shape_cast %1 : vector<16xf32> to vector<16x1xf32>
    %cst_1 = arith.constant 3.200000e+01 : f32
    %3 = vector.broadcast %cst_1 : f32 to vector<16x1xf32>
    %4 = arith.divf %2, %3 : vector<16x1xf32>
    %5 = vector.broadcast %4 : vector<16x1xf32> to vector<16x32xf32>
    %6 = arith.subf %0, %5 : vector<16x32xf32>
    %7 = arith.mulf %6, %6 : vector<16x32xf32>
    %cst_2 = arith.constant dense<0.000000e+00> : vector<16xf32>
    %8 = vector.multi_reduction <add>, %7, %cst_2 [1] : vector<16x32xf32> to vector<16xf32>
    %9 = vector.shape_cast %8 : vector<16xf32> to vector<16x1xf32>
    %cst_3 = arith.constant 3.200000e+01 : f32
    %10 = vector.broadcast %cst_3 : f32 to vector<16x1xf32>
    %11 = arith.divf %9, %10 : vector<16x1xf32>
    %cst_4 = arith.constant 9.99999974E-6 : f32
    %12 = vector.broadcast %cst_4 : f32 to vector<16x1xf32>
    %13 = arith.addf %11, %12 : vector<16x1xf32>
    %14 = math.rsqrt %13 : vector<16x1xf32>
    %15 = vector.broadcast %14 : vector<16x1xf32> to vector<16x32xf32>
    %16 = arith.mulf %6, %15 : vector<16x32xf32>
    %17 = arith.truncf %16 : vector<16x32xf32> to vector<16x32xbf16>
    %c0_5 = arith.constant 0 : index
    %c0_6 = arith.constant 0 : index
    %18 = vector.load %arg3[%c0_5, %c0_6] : memref<32x256xbf16, #tpu.memory_space<vmem>>, vector<32x256xbf16>
    %cst_7 = arith.constant dense<0.000000e+00> : vector<16x256xf32>
    %19 = tpu.matmul %17, %18, %cst_7 {dimension_numbers = #tpu.dot_dimension_numbers<[1], [0], [0], [1], [0, 0, 1, 1], [], []>} : vector<16x32xbf16>, vector<32x256xbf16>, vector<16x256xf32> -> vector<16x256xf32>
    %c0_8 = arith.constant 0 : index
    %c0_9 = arith.constant 0 : index
    %20 = vector.load %arg4[%c0_8, %c0_9] : memref<1x256xf32, #tpu.memory_space<vmem>>, vector<1x256xf32>
    %21 = vector.broadcast %20 : vector<1x256xf32> to vector<16x256xf32>
    %22 = arith.addf %19, %21 : vector<16x256xf32>
    %c0_10 = arith.constant 0 : index
    %c0_11 = arith.constant 0 : index
    %23 = vector.load %arg5[%c0_10, %c0_11] : memref<16x256xf32, #tpu.memory_space<vmem>>, vector<16x256xf32>
    tpu.vector_store %arg5[%c0_10, %c0_11], %22 {strides = array<i32>} : memref<16x256xf32, #tpu.memory_space<vmem>>, vector<16x256xf32>,
    return
  }
  func.func @transform_0(%arg0: i32, %arg1: i32) -> (i32, i32) {
    %c0_i32 = arith.constant 0 : i32
    %c0_i32_0 = arith.constant 0 : i32
    return %arg1, %c0_i32 : i32, i32
  }
  func.func @transform_1(%arg0: i32, %arg1: i32) -> (i32, i32) {
    %c0_i32 = arith.constant 0 : i32
    %c0_i32_0 = arith.constant 0 : i32
    return %c0_i32, %arg0 : i32, i32
  }
  func.func @transform_2(%arg0: i32, %arg1: i32) -> (i32, i32) {
    %c0_i32 = arith.constant 0 : i32
    %c0_i32_0 = arith.constant 0 : i32
    return %c0_i32, %arg0 : i32, i32
  }
  func.func @transform_3(%arg0: i32, %arg1: i32) -> (i32, i32) {
    %c0_i32 = arith.constant 0 : i32
    return %arg1, %arg0 : i32, i32
  }
}

</mosaic_0001>

<bundles_post_ra>
// kernel: tpu_custom_call.1
= control target key start
LH: loop header
LB: loop body
LE: loop exit
PB: predicated region body
PF: predicated region fallthrough
CT: control target
= control target key end

     0   :  { %8 = vsyncpa [#allocation3], 0  ;;  %s313_s0 = inlined_call_operand.hbm [shape: f32[16,32], index: 0, kind: input, shape index: {}]   ;;  %s314_s1 = inlined_call_operand.hbm [shape: bf16[32,256], index: 1, kind: input, shape index: {}]   ;;  %s315_s2 = inlined_call_operand.vmem [shape: f32[1,256], index: 2, kind: input, shape index: {}]   ;;  %s316_s3 = inlined_call_operand.hbm [shape: f32[16,256], index: 3, kind: output, shape index: {}]  }
   0x1   :  { %9 = vsyncpa [#allocation6], 0 }
   0x2   :  { %10 = vsyncpa [#allocation4], 0  ;;  %s268_s12 = smov [#allocation2]  }
   0x3   :  { %s16_s13 = sshll.u32 %s268_s12, 4  ;;  %s17_s13 = int_to_ptr.vmem [resolvable:$true] %s16_s13 }
   0x4   :  { %s210_s14 = scalar_lea.vmem %s17_s13, 256  ;;  %p215_p1 = scmp.lt.s32.totalorder %s17_s13, %s17_s13 }
   0x5   :  { %p211_p0 = scmp.ne.s32.totalorder %s17_s13, %s210_s14  ;;  %p216_p2 = scmp.lt.s32.totalorder %s210_s14, %s210_s14 }
   0x7   :  { %p217_p3 = por %p216_p2, %p215_p1 }
   0x9   :  { %p218_p4 = pnand %p217_p3, %p211_p0 }
   0xb   :  { %221 = shalt.err (!%p218_p4)
}
   0xc   :  { %s269_s15 = smov 128   ;;  %s270_s16 = smov 8  }
   0xd   :  { %22 = dma.hbm_to_vmem [thread:$0]  %s313_s0, 256, %s17_s13, [#allocation3], %s269_s15, %s269_s15, %s270_s16  }
   0xe   :  { %s271_s19 = smov [#allocation5]  }
   0xf   :  { %s28_s20 = sshll.u32 %s271_s19, 4  ;;  %s29_s20 = int_to_ptr.vmem [resolvable:$true] %s28_s20 }
  0x10   :  { %s230_s21 = scalar_lea.vmem %s29_s20, 512  ;;  %p235_p6 = scmp.lt.s32.totalorder %s29_s20, %s29_s20 }
  0x11   :  { %p231_p5 = scmp.ne.s32.totalorder %s29_s20, %s230_s21  ;;  %p236_p7 = scmp.lt.s32.totalorder %s230_s21, %s230_s21 }
  0x13   :  { %p237_p8 = por %p236_p7, %p235_p6 }
  0x15   :  { %p238_p9 = pnand %p237_p8, %p231_p5 }
  0x17   :  { %241 = shalt.err (!%p238_p9)
}
  0x18   :  { %34 = dma.hbm_to_vmem [thread:$0]  %s314_s1, 512, %s29_s20, [#allocation6], %s269_s15, %s269_s15, %s270_s16  }
  0x19   :  { %262 = dma.done.wait [#allocation3], 256  }
  0x1a   :  { %263 = vsyncadd [#allocation3], 4294967040 }
  0x1b   :  { %264 = dma.done.wait [#allocation6], 512  }
  0x1c   :  { %265 = vsyncadd [#allocation6], 4294966784  ;;  %vm46_vm0 = vcmask 261120   ;;  %v44_v0 = vld [vmem:[#allocation2] sm:$0xff]  ;;  %v45_v1 = vld [vmem:[#allocation2 + $0x8] sm:$0xff]  ;;  %v272_v17 = vmov 0   ;;  %v81_v30 = vlaneseq }
  0x1d   :  { %v47_v2 = vsel %vm46_vm0, %v44_v0, 0.0  ;;  %v50_v3 = vsel %vm46_vm0, %v45_v1, 0.0  ;;  %v192_v14 = vld [vmem:[#allocation5 + $0x14] ss:$8 sps:$4 sm:$0xff]   ;;  %v194_v15 = vld [vmem:[#allocation5 + $0x10] ss:$8 sps:$4 sm:$0xff]   ;;  %146 = vmatprep.mubr.bf16.mxu0 %v272_v17 }
  0x1e   :  { %48 = vadd.xlane.f32.xlu0 %v47_v2  ;;  %v195_v16 = vld [vmem:[#allocation5 + $0x4] ss:$8 sps:$4 sm:$0xff]   ;;  %126 = vmatprep.subr.bf16.mxu0 %v192_v14  ;;  %v197_v18 = vld [vmem:[#allocation5] ss:$8 sps:$4 sm:$0xff]   ;;  %v82_v31 = vshrl.u32 %v81_v30, 7  ;;  %s273_s24 = smov [#allocation7]  }
  0x1f   :  { %127 = vmatpush1.bf16.msra.mxu0 %v194_v15  ;;  %v79_v33 = vld [vmem:[%s315_s2] sm:$0x3]  ;;  %s166_s25 = sshll.u32 %s273_s24, 4  ;;  %s167_s25 = int_to_ptr.vmem [resolvable:$true] %s166_s25 }
  0x20   :  { %128 = vmatprep.subr.bf16.mxu0 %v195_v16  ;;  %v83_v32 = vsub.s32 0, %v82_v31  ;;  %v87_v34 = vsub.s32 1, %v82_v31  ;;  %s242_s26 = scalar_lea.vmem %s167_s25, 512  ;;  %p247_p11 = scmp.lt.s32.totalorder %s167_s25, %s167_s25 }
  0x21   :  { %p243_p10 = scmp.ne.s32.totalorder %s167_s25, %s242_s26  ;;  %p248_p12 = scmp.lt.s32.totalorder %s242_s26, %s242_s26 }
  0x22   :  { %51 = vadd.xlane.f32.xlu0 %v50_v3  ;;  %v84_v35 = vrot.slane %v79_v33, %v83_v32  ;;  %v88_v36 = vrot.slane %v79_v33, %v87_v34 }
  0x23   :  { %129 = vmatpush1.bf16.msra.mxu0 %v197_v18  ;;  %p249_p13 = por %p248_p12, %p247_p11 }
  0x25   :  { %p250_p0 = pnand %p249_p13, %p243_p10 }
  0xa7   :  { %v49_v4 = vpop.xlane.xlu0 %48 }
  0xa8   :  { %v54_v5 = vmul.f32 0.03125, %v49_v4 }
  0xaa   :  { %v56_v6 = vsub.f32 %v44_v0, %v54_v5 }
  0xab   :  { %v52_v7 = vpop.xlane.xlu0 %51 }
  0xac   :  { %v55_v8 = vmul.f32 0.03125, %v52_v7  ;;  %v58_v9 = vmul.f32 %v56_v6, %v56_v6 }
  0xae   :  { %v57_v10 = vsub.f32 %v45_v1, %v55_v8  ;;  %v60_v11 = vsel %vm46_vm0, %v58_v9, 0.0 }
  0xaf   :  { %61 = vadd.xlane.f32.xlu1 %v60_v11 }
  0xb0   :  { %v59_v12 = vmul.f32 %v57_v10, %v57_v10 }
  0xb2   :  { %v63_v13 = vsel %vm46_vm0, %v59_v12, 0.0 }
  0xb3   :  { %64 = vadd.xlane.f32.xlu1 %v63_v13 }
 0x138   :  { %v62_v19 = vpop.xlane.xlu1 %61 }
 0x139   :  { %v66_v20 = vmul.f32 0.03125, %v62_v19 }
 0x13b   :  { %v68_v21 = vadd.f32 1e-05, %v66_v20 }
 0x13c   :  { %v65_v22 = vpop.xlane.xlu1 %64 }
 0x13d   :  { %v67_v23 = vmul.f32 0.03125, %v65_v22  ;;  %198 = vrsqrt.f32 %v68_v21 }
 0x13f   :  { %v69_v24 = vadd.f32 1e-05, %v67_v23 }
 0x141   :  { %200 = vrsqrt.f32 %v69_v24 }
 0x14a   :  { %v199_v25 = vpop.eup %198 }
 0x14b   :  { %v72_v27 = vmul.f32 %v199_v25, %v56_v6 }
 0x14e   :  { %v201_v26 = vpop.eup %200 }
 0x14f   :  { %v73_v28 = vmul.f32 %v201_v26, %v57_v10 }
 0x151   :  { %v74_v29 = vpack.c.bf16 %v73_v28, %v72_v27 }
 0x153   :  { %183 = vmatmul.mubr.msk.bf16.vlgmr.msra.gmra.mxu0 %vm46_vm0, %v74_v29 }
 0x213   :  { %v148_v37 = vpop.f32.mrf.mxu0 }
 0x214   :  { %v149_v38 = vadd.f32 %v148_v37, %v84_v35 }
 0x215   :  { %v150_v39 = vpop.f32.mrf.mxu0 }
 0x216   :  { %157 = vst [vmem:[#allocation7] sm:$0xff] %v149_v38  ;;  %v151_v40 = vadd.f32 %v150_v39, %v88_v36 }
 0x217   :  { %v152_v41 = vpop.f32.mrf.mxu0 }
 0x218   :  { %158 = vst [vmem:[#allocation7 + $0x8] sm:$0xff] %v151_v40  ;;  %v153_v42 = vadd.f32 %v152_v41, %v84_v35 }
 0x219   :  { %v154_v43 = vpop.f32.mrf.mxu0 }
 0x21a   :  { %159 = vst [vmem:[#allocation7 + $0x10] sm:$0xff] %v153_v42  ;;  %v155_v44 = vadd.f32 %v154_v43, %v88_v36 }
 0x21c   :  { %160 = vst [vmem:[#allocation7 + $0x18] sm:$0xff] %v155_v44 }
 0x21d   :  { %253 = shalt.err (!%p250_p0)
}
 0x21e   :  { %s274_s2 = smov 256   ;;  %s275_s27 = smov 16  }
 0x21f   :  { %172 = dma.vmem_to_hbm [thread:$0]  %s167_s25, 512, %s316_s3, [#allocation4], %s274_s2, %s274_s2, %s275_s27  }
 0x220   :  { %266 = dma.done.wait [#allocation4], 512  }
 0x221   :  { %267 = vsyncadd [#allocation4], 4294966784 }
 0x222   :  { %176 = vsyncpa [#allocation3], 1 }
 0x223   :  { %177 = vsyncpa [#allocation6], 1 }
 0x224   :  { %178 = vsyncpa [#allocation4], 1 }

</bundles_post_ra>
